<compile_context>
chip_gen: v7x
topology: tpu7x:2x2x1
jax: 0.10.0
libtpu: 0.0.40
codegen_flags: <defaults>
</compile_context>

<pallas_src>
import jax
import jax.numpy as jnp
import numpy as np
from jax.experimental import pallas as pl
from jax.experimental.pallas import tpu as pltpu

_LANE = 128          # lane width (last-dim padding)
_SUBLANE = 8         # f32 sublane width (second-to-last-dim padding)
_INT8_SUBLANE = 32   # int8 packs 4 rows/sublane word -> native tile (32, 128)


def _round_up(v, m):
    return (v + m - 1) // m * m


# ----------------------------- Pallas kernel -------------------------------

def _make_fused_kernel(ops_is_min, in_feats):
    """All EdgeLayers in one kernel; activation stays in vregs/VMEM."""
    n_layers = len(ops_is_min)

    def kernel(x_ref, *refs):
        mask_refs = refs[:n_layers]      # layer l: (in_pad_l, d_pad) int8, maskT
        o_ref = refs[n_layers]           # (tile_b, d_pad) f32

        act = x_ref[...]                 # (tile_b, d_pad) f32 activation
        for l in range(n_layers):
            is_min = ops_is_min[l]
            in_f = in_feats[l]
            # Upcast the (tiny) int8 mask block once per layer.
            m = mask_refs[l][...].astype(jnp.float32)        # (in_pad_l, d_pad)

            # Tropical (min/max-plus) matmul as a running per-In-row update.
            # Only the real `in_f` rows are visited; padded rows never read.
            # TODO(synk): for large in_f convert this static unroll to
            # lax.fori_loop(..., unroll=small) to bound code size / vregs.
            acc = act[:, 0:1] + m[0:1, :]                    # init from row 0
            for k in range(1, in_f):
                term = act[:, k:k + 1] + m[k:k + 1, :]       # (tile_b, d_pad)
                acc = jnp.minimum(acc, term) if is_min else jnp.maximum(acc, term)
            act = acc                                        # feed next layer
        o_ref[...] = act

    return kernel


def edge_autoencoder_forward(x, masks, ops_is_min):
    """x: (B, in_f) f32; masks[l]: (out_l, in_l) f32 (max layers pre-negated)."""
    B, in_f0 = x.shape
    n_layers = len(masks)
    feat_dims = [masks[0].shape[1]] + [m.shape[0] for m in masks]
    d_pad = _round_up(max(feat_dims), _LANE)

    b_pad = _round_up(B, _SUBLANE)
    tile_b = min(b_pad, 128)                 # batch tile (parallel grid axis)
    b_pad = _round_up(b_pad, tile_b)

    x_p = jnp.zeros((b_pad, d_pad), jnp.float32).at[:B, :in_f0].set(
        x.astype(jnp.float32))

    # Masks transposed to (In, Out) so the OUTPUT feature axis rides the lane
    # axis (lane-dense stores).  Stored int8 ({0, +/-1} exact); Out padded with
    # 0 to d_pad lanes, In padded with 0 to an int8-native sublane multiple.
    # Padding is inert because the kernel only loops over the real In rows and
    # padded Out lanes are sliced off after the call.
    masks_p = []
    in_feats = []
    for m in masks:
        out_f, inn_f = m.shape
        in_feats.append(inn_f)
        in_pad = _round_up(inn_f, _INT8_SUBLANE)
        mt = jnp.zeros((in_pad, d_pad), jnp.int8)
        mt = mt.at[:inn_f, :out_f].set(m.T.astype(jnp.int8))
        masks_p.append(mt)

    kernel = _make_fused_kernel(tuple(ops_is_min), tuple(in_feats))

    grid = (b_pad // tile_b,)
    x_spec = pl.BlockSpec((tile_b, d_pad), lambda i: (i, 0))
    m_specs = [pl.BlockSpec(mp.shape, lambda i: (0, 0)) for mp in masks_p]
    out_spec = pl.BlockSpec((tile_b, d_pad), lambda i: (i, 0))

    # TODO(synk): at non-toy D, tile the Out (lane) axis of the masks/output
    # with a second grid axis, set vmem_limit_bytes, and single-buffer the
    # constant-index mask specs (pipeline_mode=pl.Buffered(1)).
    out_p = pl.pallas_call(
        kernel,
        out_shape=jax.ShapeDtypeStruct((b_pad, d_pad), jnp.float32),
        grid=grid,
        in_specs=[x_spec] + m_specs,
        out_specs=out_spec,
        compiler_params=pltpu.CompilerParams(
            dimension_semantics=("parallel",)),
    )(x_p, *masks_p)

    out_f_last = masks[-1].shape[0]
    return out_p[:B, :out_f_last]


# ----------------------------- JAX "glue" ----------------------------------

def compute_layer_mask(edges, key, *, is_max: bool):
    """EdgeLayer mask construction (softmax -> bernoulli ->
    zero_connection_neuron -> optional negation); deterministic jax.random
    stand-in for the torch/python RNG streams."""
    prob = jax.nn.softmax(edges, axis=-1)            # (Out, In, 2)
    p_edge = prob[..., 1]                            # (Out, In)
    k_bern, k_fix = jax.random.split(key)
    mask = jax.random.bernoulli(k_bern, p_edge).astype(jnp.float32)

    # zero_connection_neuron: rows with no connections get one random one.
    conn = jnp.count_nonzero(mask, axis=-1)          # (Out,)
    rand_idx = jax.random.randint(k_fix, (mask.shape[0],), 0, mask.shape[1])
    fix = jax.nn.one_hot(rand_idx, mask.shape[1], dtype=jnp.float32)
    mask = jnp.where((conn == 0)[:, None], mask + fix, mask)

    if is_max:           # `if self.operator == torch.max: mask *= -1`
        mask = -mask
    return mask


def edge_layer_ref(x, mask, *, is_min: bool):
    s = x[:, None, :] + mask[None, :, :]
    return jnp.min(s, axis=-1) if is_min else jnp.max(s, axis=-1)


# ------------------------------- driver ------------------------------------

if __name__ == "__main__":
    key = jax.random.PRNGKey(0)

    batch = 2
    in_features = 16
    hidden_sizes = [8, 12]
    layer_sizes = [in_features, *hidden_sizes, in_features]   # [16, 8, 12, 16]
    n_layers = len(layer_sizes) - 1
    # operators: torch.min for even i, torch.max for odd i
    ops_is_min = [(i % 2 == 0) for i in range(n_layers)]

    keys = jax.random.split(key, 1 + 2 * n_layers)
    x = jax.random.normal(keys[0], (batch, in_features), dtype=jnp.float32)

    # Deterministic parameter init (torch.randn(out, in, 2) analogue) + masks.
    # TODO(synk): torch.manual_seed(0)/torch.bernoulli/random.randint streams
    # are not bit-reproducible in JAX; masks are sampled with jax.random.
    masks = []
    for i in range(n_layers):
        in_f, out_f = layer_sizes[i], layer_sizes[i + 1]
        edges = jax.random.normal(keys[1 + 2 * i], (out_f, in_f, 2),
                                  dtype=jnp.float32)
        mask = compute_layer_mask(edges, keys[2 + 2 * i],
                                  is_max=not ops_is_min[i])
        masks.append(mask)

    out = edge_autoencoder_forward(x, masks, ops_is_min)
    out = jax.block_until_ready(out)

    # Pure-JAX reference check (same masks, same min/max-plus layers).
    ref = x
    for mask, is_min in zip(masks, ops_is_min):
        ref = edge_layer_ref(ref, mask, is_min=is_min)
    np.testing.assert_allclose(np.asarray(out), np.asarray(ref),
                               rtol=1e-6, atol=1e-6)

    assert out.shape == (batch, in_features)
    print("KERNEL_OK")
</pallas_src>

<mosaic_0001>
module attributes {stable_mosaic.version = 11 : i64} {
  func.func @kernel(%arg0: i32, %arg1: memref<8x128xf32, #tpu.memory_space<vmem>>, %arg2: memref<32x128xi8, #tpu.memory_space<vmem>>, %arg3: memref<32x128xi8, #tpu.memory_space<vmem>>, %arg4: memref<32x128xi8, #tpu.memory_space<vmem>>, %arg5: memref<8x128xf32, #tpu.memory_space<vmem>>) attributes {dimension_semantics = [#tpu.dimension_semantics<parallel>], iteration_bounds = array<i64: 1>, scalar_prefetch = 0 : i64, scratch_operands = 0 : i64, tpu.core_type = #tpu.core_type<tc>, window_params = [{transform_indices = @transform_0, window_bounds = array<i64: 8, 128>}, {pipeline_mode = #tpu.pipeline_mode<synchronous>, transform_indices = @transform_1, window_bounds = array<i64: 32, 128>}, {pipeline_mode = #tpu.pipeline_mode<synchronous>, transform_indices = @transform_2, window_bounds = array<i64: 32, 128>}, {pipeline_mode = #tpu.pipeline_mode<synchronous>, transform_indices = @transform_3, window_bounds = array<i64: 32, 128>}, {transform_indices = @transform_4, window_bounds = array<i64: 8, 128>}]} {
    %c0 = arith.constant 0 : index
    %c0_0 = arith.constant 0 : index
    %0 = vector.load %arg1[%c0, %c0_0] : memref<8x128xf32, #tpu.memory_space<vmem>>, vector<8x128xf32>
    %c0_1 = arith.constant 0 : index
    %c0_2 = arith.constant 0 : index
    %1 = vector.load %arg2[%c0_1, %c0_2] : memref<32x128xi8, #tpu.memory_space<vmem>>, vector<32x128xi8>
    %2 = arith.sitofp %1 : vector<32x128xi8> to vector<32x128xf32>
    %3 = vector.extract_strided_slice %0 {offsets = [0, 0], sizes = [8, 1], strides = [1, 1]} : vector<8x128xf32> to vector<8x1xf32>
    %4 = vector.extract_strided_slice %2 {offsets = [0, 0], sizes = [1, 128], strides = [1, 1]} : vector<32x128xf32> to vector<1x128xf32>
    %5 = vector.broadcast %3 : vector<8x1xf32> to vector<8x128xf32>
    %6 = vector.broadcast %4 : vector<1x128xf32> to vector<8x128xf32>
    %7 = arith.addf %5, %6 : vector<8x128xf32>
    %8 = vector.extract_strided_slice %0 {offsets = [0, 1], sizes = [8, 1], strides = [1, 1]} : vector<8x128xf32> to vector<8x1xf32>
    %9 = vector.extract_strided_slice %2 {offsets = [1, 0], sizes = [1, 128], strides = [1, 1]} : vector<32x128xf32> to vector<1x128xf32>
    %10 = vector.broadcast %8 : vector<8x1xf32> to vector<8x128xf32>
    %11 = vector.broadcast %9 : vector<1x128xf32> to vector<8x128xf32>
    %12 = arith.addf %10, %11 : vector<8x128xf32>
    %13 = arith.minimumf %7, %12 : vector<8x128xf32>
    %14 = vector.extract_strided_slice %0 {offsets = [0, 2], sizes = [8, 1], strides = [1, 1]} : vector<8x128xf32> to vector<8x1xf32>
    %15 = vector.extract_strided_slice %2 {offsets = [2, 0], sizes = [1, 128], strides = [1, 1]} : vector<32x128xf32> to vector<1x128xf32>
    %16 = vector.broadcast %14 : vector<8x1xf32> to vector<8x128xf32>
    %17 = vector.broadcast %15 : vector<1x128xf32> to vector<8x128xf32>
    %18 = arith.addf %16, %17 : vector<8x128xf32>
    %19 = arith.minimumf %13, %18 : vector<8x128xf32>
    %20 = vector.extract_strided_slice %0 {offsets = [0, 3], sizes = [8, 1], strides = [1, 1]} : vector<8x128xf32> to vector<8x1xf32>
    %21 = vector.extract_strided_slice %2 {offsets = [3, 0], sizes = [1, 128], strides = [1, 1]} : vector<32x128xf32> to vector<1x128xf32>
    %22 = vector.broadcast %20 : vector<8x1xf32> to vector<8x128xf32>
    %23 = vector.broadcast %21 : vector<1x128xf32> to vector<8x128xf32>
    %24 = arith.addf %22, %23 : vector<8x128xf32>
    %25 = arith.minimumf %19, %24 : vector<8x128xf32>
    %26 = vector.extract_strided_slice %0 {offsets = [0, 4], sizes = [8, 1], strides = [1, 1]} : vector<8x128xf32> to vector<8x1xf32>
    %27 = vector.extract_strided_slice %2 {offsets = [4, 0], sizes = [1, 128], strides = [1, 1]} : vector<32x128xf32> to vector<1x128xf32>
    %28 = vector.broadcast %26 : vector<8x1xf32> to vector<8x128xf32>
    %29 = vector.broadcast %27 : vector<1x128xf32> to vector<8x128xf32>
    %30 = arith.addf %28, %29 : vector<8x128xf32>
    %31 = arith.minimumf %25, %30 : vector<8x128xf32>
    %32 = vector.extract_strided_slice %0 {offsets = [0, 5], sizes = [8, 1], strides = [1, 1]} : vector<8x128xf32> to vector<8x1xf32>
    %33 = vector.extract_strided_slice %2 {offsets = [5, 0], sizes = [1, 128], strides = [1, 1]} : vector<32x128xf32> to vector<1x128xf32>
    %34 = vector.broadcast %32 : vector<8x1xf32> to vector<8x128xf32>
    %35 = vector.broadcast %33 : vector<1x128xf32> to vector<8x128xf32>
    %36 = arith.addf %34, %35 : vector<8x128xf32>
    %37 = arith.minimumf %31, %36 : vector<8x128xf32>
    %38 = vector.extract_strided_slice %0 {offsets = [0, 6], sizes = [8, 1], strides = [1, 1]} : vector<8x128xf32> to vector<8x1xf32>
    %39 = vector.extract_strided_slice %2 {offsets = [6, 0], sizes = [1, 128], strides = [1, 1]} : vector<32x128xf32> to vector<1x128xf32>
    %40 = vector.broadcast %38 : vector<8x1xf32> to vector<8x128xf32>
    %41 = vector.broadcast %39 : vector<1x128xf32> to vector<8x128xf32>
    %42 = arith.addf %40, %41 : vector<8x128xf32>
    %43 = arith.minimumf %37, %42 : vector<8x128xf32>
    %44 = vector.extract_strided_slice %0 {offsets = [0, 7], sizes = [8, 1], strides = [1, 1]} : vector<8x128xf32> to vector<8x1xf32>
    %45 = vector.extract_strided_slice %2 {offsets = [7, 0], sizes = [1, 128], strides = [1, 1]} : vector<32x128xf32> to vector<1x128xf32>
    %46 = vector.broadcast %44 : vector<8x1xf32> to vector<8x128xf32>
    %47 = vector.broadcast %45 : vector<1x128xf32> to vector<8x128xf32>
    %48 = arith.addf %46, %47 : vector<8x128xf32>
    %49 = arith.minimumf %43, %48 : vector<8x128xf32>
    %50 = vector.extract_strided_slice %0 {offsets = [0, 8], sizes = [8, 1], strides = [1, 1]} : vector<8x128xf32> to vector<8x1xf32>
    %51 = vector.extract_strided_slice %2 {offsets = [8, 0], sizes = [1, 128], strides = [1, 1]} : vector<32x128xf32> to vector<1x128xf32>
    %52 = vector.broadcast %50 : vector<8x1xf32> to vector<8x128xf32>
    %53 = vector.broadcast %51 : vector<1x128xf32> to vector<8x128xf32>
    %54 = arith.addf %52, %53 : vector<8x128xf32>
    %55 = arith.minimumf %49, %54 : vector<8x128xf32>
    %56 = vector.extract_strided_slice %0 {offsets = [0, 9], sizes = [8, 1], strides = [1, 1]} : vector<8x128xf32> to vector<8x1xf32>
    %57 = vector.extract_strided_slice %2 {offsets = [9, 0], sizes = [1, 128], strides = [1, 1]} : vector<32x128xf32> to vector<1x128xf32>
    %58 = vector.broadcast %56 : vector<8x1xf32> to vector<8x128xf32>
    %59 = vector.broadcast %57 : vector<1x128xf32> to vector<8x128xf32>
    %60 = arith.addf %58, %59 : vector<8x128xf32>
    %61 = arith.minimumf %55, %60 : vector<8x128xf32>
    %62 = vector.extract_strided_slice %0 {offsets = [0, 10], sizes = [8, 1], strides = [1, 1]} : vector<8x128xf32> to vector<8x1xf32>
    %63 = vector.extract_strided_slice %2 {offsets = [10, 0], sizes = [1, 128], strides = [1, 1]} : vector<32x128xf32> to vector<1x128xf32>
    %64 = vector.broadcast %62 : vector<8x1xf32> to vector<8x128xf32>
    %65 = vector.broadcast %63 : vector<1x128xf32> to vector<8x128xf32>
    %66 = arith.addf %64, %65 : vector<8x128xf32>
    %67 = arith.minimumf %61, %66 : vector<8x128xf32>
    %68 = vector.extract_strided_slice %0 {offsets = [0, 11], sizes = [8, 1], strides = [1, 1]} : vector<8x128xf32> to vector<8x1xf32>
    %69 = vector.extract_strided_slice %2 {offsets = [11, 0], sizes = [1, 128], strides = [1, 1]} : vector<32x128xf32> to vector<1x128xf32>
    %70 = vector.broadcast %68 : vector<8x1xf32> to vector<8x128xf32>
    %71 = vector.broadcast %69 : vector<1x128xf32> to vector<8x128xf32>
    %72 = arith.addf %70, %71 : vector<8x128xf32>
    %73 = arith.minimumf %67, %72 : vector<8x128xf32>
    %74 = vector.extract_strided_slice %0 {offsets = [0, 12], sizes = [8, 1], strides = [1, 1]} : vector<8x128xf32> to vector<8x1xf32>
    %75 = vector.extract_strided_slice %2 {offsets = [12, 0], sizes = [1, 128], strides = [1, 1]} : vector<32x128xf32> to vector<1x128xf32>
    %76 = vector.broadcast %74 : vector<8x1xf32> to vector<8x128xf32>
    %77 = vector.broadcast %75 : vector<1x128xf32> to vector<8x128xf32>
    %78 = arith.addf %76, %77 : vector<8x128xf32>
    %79 = arith.minimumf %73, %78 : vector<8x128xf32>
    %80 = vector.extract_strided_slice %0 {offsets = [0, 13], sizes = [8, 1], strides = [1, 1]} : vector<8x128xf32> to vector<8x1xf32>
    %81 = vector.extract_strided_slice %2 {offsets = [13, 0], sizes = [1, 128], strides = [1, 1]} : vector<32x128xf32> to vector<1x128xf32>
    %82 = vector.broadcast %80 : vector<8x1xf32> to vector<8x128xf32>
    %83 = vector.broadcast %81 : vector<1x128xf32> to vector<8x128xf32>
    %84 = arith.addf %82, %83 : vector<8x128xf32>
    %85 = arith.minimumf %79, %84 : vector<8x128xf32>
    %86 = vector.extract_strided_slice %0 {offsets = [0, 14], sizes = [8, 1], strides = [1, 1]} : vector<8x128xf32> to vector<8x1xf32>
    %87 = vector.extract_strided_slice %2 {offsets = [14, 0], sizes = [1, 128], strides = [1, 1]} : vector<32x128xf32> to vector<1x128xf32>
    %88 = vector.broadcast %86 : vector<8x1xf32> to vector<8x128xf32>
    %89 = vector.broadcast %87 : vector<1x128xf32> to vector<8x128xf32>
    %90 = arith.addf %88, %89 : vector<8x128xf32>
    %91 = arith.minimumf %85, %90 : vector<8x128xf32>
    %92 = vector.extract_strided_slice %0 {offsets = [0, 15], sizes = [8, 1], strides = [1, 1]} : vector<8x128xf32> to vector<8x1xf32>
    %93 = vector.extract_strided_slice %2 {offsets = [15, 0], sizes = [1, 128], strides = [1, 1]} : vector<32x128xf32> to vector<1x128xf32>
    %94 = vector.broadcast %92 : vector<8x1xf32> to vector<8x128xf32>
    %95 = vector.broadcast %93 : vector<1x128xf32> to vector<8x128xf32>
    %96 = arith.addf %94, %95 : vector<8x128xf32>
    %97 = arith.minimumf %91, %96 : vector<8x128xf32>
    %c0_3 = arith.constant 0 : index
    %c0_4 = arith.constant 0 : index
    %98 = vector.load %arg3[%c0_3, %c0_4] : memref<32x128xi8, #tpu.memory_space<vmem>>, vector<32x128xi8>
    %99 = arith.sitofp %98 : vector<32x128xi8> to vector<32x128xf32>
    %100 = vector.extract_strided_slice %97 {offsets = [0, 0], sizes = [8, 1], strides = [1, 1]} : vector<8x128xf32> to vector<8x1xf32>
    %101 = vector.extract_strided_slice %99 {offsets = [0, 0], sizes = [1, 128], strides = [1, 1]} : vector<32x128xf32> to vector<1x128xf32>
    %102 = vector.broadcast %100 : vector<8x1xf32> to vector<8x128xf32>
    %103 = vector.broadcast %101 : vector<1x128xf32> to vector<8x128xf32>
    %104 = arith.addf %102, %103 : vector<8x128xf32>
    %105 = vector.extract_strided_slice %97 {offsets = [0, 1], sizes = [8, 1], strides = [1, 1]} : vector<8x128xf32> to vector<8x1xf32>
    %106 = vector.extract_strided_slice %99 {offsets = [1, 0], sizes = [1, 128], strides = [1, 1]} : vector<32x128xf32> to vector<1x128xf32>
    %107 = vector.broadcast %105 : vector<8x1xf32> to vector<8x128xf32>
    %108 = vector.broadcast %106 : vector<1x128xf32> to vector<8x128xf32>
    %109 = arith.addf %107, %108 : vector<8x128xf32>
    %110 = arith.maximumf %104, %109 : vector<8x128xf32>
    %111 = vector.extract_strided_slice %97 {offsets = [0, 2], sizes = [8, 1], strides = [1, 1]} : vector<8x128xf32> to vector<8x1xf32>
    %112 = vector.extract_strided_slice %99 {offsets = [2, 0], sizes = [1, 128], strides = [1, 1]} : vector<32x128xf32> to vector<1x128xf32>
    %113 = vector.broadcast %111 : vector<8x1xf32> to vector<8x128xf32>
    %114 = vector.broadcast %112 : vector<1x128xf32> to vector<8x128xf32>
    %115 = arith.addf %113, %114 : vector<8x128xf32>
    %116 = arith.maximumf %110, %115 : vector<8x128xf32>
    %117 = vector.extract_strided_slice %97 {offsets = [0, 3], sizes = [8, 1], strides = [1, 1]} : vector<8x128xf32> to vector<8x1xf32>
    %118 = vector.extract_strided_slice %99 {offsets = [3, 0], sizes = [1, 128], strides = [1, 1]} : vector<32x128xf32> to vector<1x128xf32>
    %119 = vector.broadcast %117 : vector<8x1xf32> to vector<8x128xf32>
    %120 = vector.broadcast %118 : vector<1x128xf32> to vector<8x128xf32>
    %121 = arith.addf %119, %120 : vector<8x128xf32>
    %122 = arith.maximumf %116, %121 : vector<8x128xf32>
    %123 = vector.extract_strided_slice %97 {offsets = [0, 4], sizes = [8, 1], strides = [1, 1]} : vector<8x128xf32> to vector<8x1xf32>
    %124 = vector.extract_strided_slice %99 {offsets = [4, 0], sizes = [1, 128], strides = [1, 1]} : vector<32x128xf32> to vector<1x128xf32>
    %125 = vector.broadcast %123 : vector<8x1xf32> to vector<8x128xf32>
    %126 = vector.broadcast %124 : vector<1x128xf32> to vector<8x128xf32>
    %127 = arith.addf %125, %126 : vector<8x128xf32>
    %128 = arith.maximumf %122, %127 : vector<8x128xf32>
    %129 = vector.extract_strided_slice %97 {offsets = [0, 5], sizes = [8, 1], strides = [1, 1]} : vector<8x128xf32> to vector<8x1xf32>
    %130 = vector.extract_strided_slice %99 {offsets = [5, 0], sizes = [1, 128], strides = [1, 1]} : vector<32x128xf32> to vector<1x128xf32>
    %131 = vector.broadcast %129 : vector<8x1xf32> to vector<8x128xf32>
    %132 = vector.broadcast %130 : vector<1x128xf32> to vector<8x128xf32>
    %133 = arith.addf %131, %132 : vector<8x128xf32>
    %134 = arith.maximumf %128, %133 : vector<8x128xf32>
    %135 = vector.extract_strided_slice %97 {offsets = [0, 6], sizes = [8, 1], strides = [1, 1]} : vector<8x128xf32> to vector<8x1xf32>
    %136 = vector.extract_strided_slice %99 {offsets = [6, 0], sizes = [1, 128], strides = [1, 1]} : vector<32x128xf32> to vector<1x128xf32>
    %137 = vector.broadcast %135 : vector<8x1xf32> to vector<8x128xf32>
    %138 = vector.broadcast %136 : vector<1x128xf32> to vector<8x128xf32>
    %139 = arith.addf %137, %138 : vector<8x128xf32>
    %140 = arith.maximumf %134, %139 : vector<8x128xf32>
    %141 = vector.extract_strided_slice %97 {offsets = [0, 7], sizes = [8, 1], strides = [1, 1]} : vector<8x128xf32> to vector<8x1xf32>
    %142 = vector.extract_strided_slice %99 {offsets = [7, 0], sizes = [1, 128], strides = [1, 1]} : vector<32x128xf32> to vector<1x128xf32>
    %143 = vector.broadcast %141 : vector<8x1xf32> to vector<8x128xf32>
    %144 = vector.broadcast %142 : vector<1x128xf32> to vector<8x128xf32>
    %145 = arith.addf %143, %144 : vector<8x128xf32>
    %146 = arith.maximumf %140, %145 : vector<8x128xf32>
    %c0_5 = arith.constant 0 : index
    %c0_6 = arith.constant 0 : index
    %147 = vector.load %arg4[%c0_5, %c0_6] : memref<32x128xi8, #tpu.memory_space<vmem>>, vector<32x128xi8>
    %148 = arith.sitofp %147 : vector<32x128xi8> to vector<32x128xf32>
    %149 = vector.extract_strided_slice %146 {offsets = [0, 0], sizes = [8, 1], strides = [1, 1]} : vector<8x128xf32> to vector<8x1xf32>
    %150 = vector.extract_strided_slice %148 {offsets = [0, 0], sizes = [1, 128], strides = [1, 1]} : vector<32x128xf32> to vector<1x128xf32>
    %151 = vector.broadcast %149 : vector<8x1xf32> to vector<8x128xf32>
    %152 = vector.broadcast %150 : vector<1x128xf32> to vector<8x128xf32>
    %153 = arith.addf %151, %152 : vector<8x128xf32>
    %154 = vector.extract_strided_slice %146 {offsets = [0, 1], sizes = [8, 1], strides = [1, 1]} : vector<8x128xf32> to vector<8x1xf32>
    %155 = vector.extract_strided_slice %148 {offsets = [1, 0], sizes = [1, 128], strides = [1, 1]} : vector<32x128xf32> to vector<1x128xf32>
    %156 = vector.broadcast %154 : vector<8x1xf32> to vector<8x128xf32>
    %157 = vector.broadcast %155 : vector<1x128xf32> to vector<8x128xf32>
    %158 = arith.addf %156, %157 : vector<8x128xf32>
    %159 = arith.minimumf %153, %158 : vector<8x128xf32>
    %160 = vector.extract_strided_slice %146 {offsets = [0, 2], sizes = [8, 1], strides = [1, 1]} : vector<8x128xf32> to vector<8x1xf32>
    %161 = vector.extract_strided_slice %148 {offsets = [2, 0], sizes = [1, 128], strides = [1, 1]} : vector<32x128xf32> to vector<1x128xf32>
    %162 = vector.broadcast %160 : vector<8x1xf32> to vector<8x128xf32>
    %163 = vector.broadcast %161 : vector<1x128xf32> to vector<8x128xf32>
    %164 = arith.addf %162, %163 : vector<8x128xf32>
    %165 = arith.minimumf %159, %164 : vector<8x128xf32>
    %166 = vector.extract_strided_slice %146 {offsets = [0, 3], sizes = [8, 1], strides = [1, 1]} : vector<8x128xf32> to vector<8x1xf32>
    %167 = vector.extract_strided_slice %148 {offsets = [3, 0], sizes = [1, 128], strides = [1, 1]} : vector<32x128xf32> to vector<1x128xf32>
    %168 = vector.broadcast %166 : vector<8x1xf32> to vector<8x128xf32>
    %169 = vector.broadcast %167 : vector<1x128xf32> to vector<8x128xf32>
    %170 = arith.addf %168, %169 : vector<8x128xf32>
    %171 = arith.minimumf %165, %170 : vector<8x128xf32>
    %172 = vector.extract_strided_slice %146 {offsets = [0, 4], sizes = [8, 1], strides = [1, 1]} : vector<8x128xf32> to vector<8x1xf32>
    %173 = vector.extract_strided_slice %148 {offsets = [4, 0], sizes = [1, 128], strides = [1, 1]} : vector<32x128xf32> to vector<1x128xf32>
    %174 = vector.broadcast %172 : vector<8x1xf32> to vector<8x128xf32>
    %175 = vector.broadcast %173 : vector<1x128xf32> to vector<8x128xf32>
    %176 = arith.addf %174, %175 : vector<8x128xf32>
    %177 = arith.minimumf %171, %176 : vector<8x128xf32>
    %178 = vector.extract_strided_slice %146 {offsets = [0, 5], sizes = [8, 1], strides = [1, 1]} : vector<8x128xf32> to vector<8x1xf32>
    %179 = vector.extract_strided_slice %148 {offsets = [5, 0], sizes = [1, 128], strides = [1, 1]} : vector<32x128xf32> to vector<1x128xf32>
    %180 = vector.broadcast %178 : vector<8x1xf32> to vector<8x128xf32>
    %181 = vector.broadcast %179 : vector<1x128xf32> to vector<8x128xf32>
    %182 = arith.addf %180, %181 : vector<8x128xf32>
    %183 = arith.minimumf %177, %182 : vector<8x128xf32>
    %184 = vector.extract_strided_slice %146 {offsets = [0, 6], sizes = [8, 1], strides = [1, 1]} : vector<8x128xf32> to vector<8x1xf32>
    %185 = vector.extract_strided_slice %148 {offsets = [6, 0], sizes = [1, 128], strides = [1, 1]} : vector<32x128xf32> to vector<1x128xf32>
    %186 = vector.broadcast %184 : vector<8x1xf32> to vector<8x128xf32>
    %187 = vector.broadcast %185 : vector<1x128xf32> to vector<8x128xf32>
    %188 = arith.addf %186, %187 : vector<8x128xf32>
    %189 = arith.minimumf %183, %188 : vector<8x128xf32>
    %190 = vector.extract_strided_slice %146 {offsets = [0, 7], sizes = [8, 1], strides = [1, 1]} : vector<8x128xf32> to vector<8x1xf32>
    %191 = vector.extract_strided_slice %148 {offsets = [7, 0], sizes = [1, 128], strides = [1, 1]} : vector<32x128xf32> to vector<1x128xf32>
    %192 = vector.broadcast %190 : vector<8x1xf32> to vector<8x128xf32>
    %193 = vector.broadcast %191 : vector<1x128xf32> to vector<8x128xf32>
    %194 = arith.addf %192, %193 : vector<8x128xf32>
    %195 = arith.minimumf %189, %194 : vector<8x128xf32>
    %196 = vector.extract_strided_slice %146 {offsets = [0, 8], sizes = [8, 1], strides = [1, 1]} : vector<8x128xf32> to vector<8x1xf32>
    %197 = vector.extract_strided_slice %148 {offsets = [8, 0], sizes = [1, 128], strides = [1, 1]} : vector<32x128xf32> to vector<1x128xf32>
    %198 = vector.broadcast %196 : vector<8x1xf32> to vector<8x128xf32>
    %199 = vector.broadcast %197 : vector<1x128xf32> to vector<8x128xf32>
    %200 = arith.addf %198, %199 : vector<8x128xf32>
    %201 = arith.minimumf %195, %200 : vector<8x128xf32>
    %202 = vector.extract_strided_slice %146 {offsets = [0, 9], sizes = [8, 1], strides = [1, 1]} : vector<8x128xf32> to vector<8x1xf32>
    %203 = vector.extract_strided_slice %148 {offsets = [9, 0], sizes = [1, 128], strides = [1, 1]} : vector<32x128xf32> to vector<1x128xf32>
    %204 = vector.broadcast %202 : vector<8x1xf32> to vector<8x128xf32>
    %205 = vector.broadcast %203 : vector<1x128xf32> to vector<8x128xf32>
    %206 = arith.addf %204, %205 : vector<8x128xf32>
    %207 = arith.minimumf %201, %206 : vector<8x128xf32>
    %208 = vector.extract_strided_slice %146 {offsets = [0, 10], sizes = [8, 1], strides = [1, 1]} : vector<8x128xf32> to vector<8x1xf32>
    %209 = vector.extract_strided_slice %148 {offsets = [10, 0], sizes = [1, 128], strides = [1, 1]} : vector<32x128xf32> to vector<1x128xf32>
    %210 = vector.broadcast %208 : vector<8x1xf32> to vector<8x128xf32>
    %211 = vector.broadcast %209 : vector<1x128xf32> to vector<8x128xf32>
    %212 = arith.addf %210, %211 : vector<8x128xf32>
    %213 = arith.minimumf %207, %212 : vector<8x128xf32>
    %214 = vector.extract_strided_slice %146 {offsets = [0, 11], sizes = [8, 1], strides = [1, 1]} : vector<8x128xf32> to vector<8x1xf32>
    %215 = vector.extract_strided_slice %148 {offsets = [11, 0], sizes = [1, 128], strides = [1, 1]} : vector<32x128xf32> to vector<1x128xf32>
    %216 = vector.broadcast %214 : vector<8x1xf32> to vector<8x128xf32>
    %217 = vector.broadcast %215 : vector<1x128xf32> to vector<8x128xf32>
    %218 = arith.addf %216, %217 : vector<8x128xf32>
    %219 = arith.minimumf %213, %218 : vector<8x128xf32>
    %c0_7 = arith.constant 0 : index
    %c0_8 = arith.constant 0 : index
    %220 = vector.load %arg5[%c0_7, %c0_8] : memref<8x128xf32, #tpu.memory_space<vmem>>, vector<8x128xf32>
    tpu.vector_store %arg5[%c0_7, %c0_8], %219 {strides = array<i32>} : memref<8x128xf32, #tpu.memory_space<vmem>>, vector<8x128xf32>,
    return
  }
  func.func @transform_0(%arg0: i32) -> (i32, i32) {
    %c0_i32 = arith.constant 0 : i32
    %c0_i32_0 = arith.constant 0 : i32
    return %arg0, %c0_i32 : i32, i32
  }
  func.func @transform_1(%arg0: i32) -> (i32, i32) {
    %c0_i32 = arith.constant 0 : i32
    %c0_i32_0 = arith.constant 0 : i32
    %c0_i32_1 = arith.constant 0 : i32
    return %c0_i32, %c0_i32_0 : i32, i32
  }
  func.func @transform_2(%arg0: i32) -> (i32, i32) {
    %c0_i32 = arith.constant 0 : i32
    %c0_i32_0 = arith.constant 0 : i32
    %c0_i32_1 = arith.constant 0 : i32
    return %c0_i32, %c0_i32_0 : i32, i32
  }
  func.func @transform_3(%arg0: i32) -> (i32, i32) {
    %c0_i32 = arith.constant 0 : i32
    %c0_i32_0 = arith.constant 0 : i32
    %c0_i32_1 = arith.constant 0 : i32
    return %c0_i32, %c0_i32_0 : i32, i32
  }
  func.func @transform_4(%arg0: i32) -> (i32, i32) {
    %c0_i32 = arith.constant 0 : i32
    %c0_i32_0 = arith.constant 0 : i32
    return %arg0, %c0_i32 : i32, i32
  }
}

</mosaic_0001>

<bundles_post_ra>
// kernel: tpu_custom_call.1
= control target key start
LH: loop header
LB: loop body
LE: loop exit
PB: predicated region body
PF: predicated region fallthrough
CT: control target
= control target key end

     0   :  { %9 = vsyncpa [#allocation3], 0  ;;  %s774_s0 = inlined_call_operand.hbm [shape: f32[8,128], index: 0, kind: input, shape index: {}]   ;;  %s775_s1 = inlined_call_operand.hbm [shape: s8[32,128], index: 1, kind: input, shape index: {}]   ;;  %s776_s2 = inlined_call_operand.hbm [shape: s8[32,128], index: 2, kind: input, shape index: {}]   ;;  %s777_s3 = inlined_call_operand.vmem [shape: s8[32,128], index: 3, kind: input, shape index: {}]   ;;  %s778_s4 = inlined_call_operand.hbm [shape: f32[8,128], index: 4, kind: output, shape index: {}]  }
   0x1   :  { %10 = vsyncpa [#allocation6], 0 }
   0x2   :  { %11 = vsyncpa [#allocation4], 0  ;;  %s594_s15 = smov [#allocation5]   ;;  %s595_s17 = smov [#allocation2]  }
   0x3   :  { %s28_s16 = sshll.u32 %s594_s15, 4  ;;  %s18_s18 = sshll.u32 %s595_s17, 4  ;;  %s29_s16 = int_to_ptr.vmem [resolvable:$true] %s28_s16  ;;  %s19_s18 = int_to_ptr.vmem [resolvable:$true] %s18_s18 }
   0x4   :  { %s500_s21 = scalar_lea.hbm %s775_s1, 128 }
   0x5   :  { %p501_p0 = scmp.ne.s32.totalorder %s775_s1, %s500_s21  ;;  %p504_p1 = scmp.lt.u32.totalorder %s500_s21, %s775_s1 }
   0x7   :  { %p506_p2 = pnand %p504_p1, %p501_p0 }
   0x9   :  { %509 = shalt.err (!%p506_p2)
}
   0xa   :  { %s510_s26 = scalar_lea.vmem %s29_s16, 128  ;;  %p515_p4 = scmp.lt.s32.totalorder %s29_s16, %s29_s16 }
   0xb   :  { %p511_p3 = scmp.ne.s32.totalorder %s29_s16, %s510_s26  ;;  %p516_p5 = scmp.lt.s32.totalorder %s510_s26, %s510_s26 }
   0xd   :  { %p517_p6 = por %p516_p5, %p515_p4 }
   0xf   :  { %p518_p7 = pnand %p517_p6, %p511_p3 }
  0x11   :  { %521 = shalt.err (!%p518_p7)
}
  0x12   :  { %31 = dma.hbm_to_vmem [thread:$0]  %s775_s1, 128, %s29_s16, [#allocation6]  }
  0x13   :  { %s522_s5 = scalar_lea.hbm %s774_s0, 128 }
  0x14   :  { %p523_p8 = scmp.ne.s32.totalorder %s774_s0, %s522_s5  ;;  %p526_p9 = scmp.lt.u32.totalorder %s522_s5, %s774_s0 }
  0x16   :  { %p528_p10 = pnand %p526_p9, %p523_p8 }
  0x18   :  { %531 = shalt.err (!%p528_p10)
}
  0x19   :  { %s532_s10 = scalar_lea.vmem %s19_s18, 128  ;;  %p537_p12 = scmp.lt.s32.totalorder %s19_s18, %s19_s18 }
  0x1a   :  { %p533_p11 = scmp.ne.s32.totalorder %s19_s18, %s532_s10  ;;  %p538_p13 = scmp.lt.s32.totalorder %s532_s10, %s532_s10 }
  0x1c   :  { %p539_p0 = por %p538_p13, %p537_p12 }
  0x1e   :  { %p540_p1 = pnand %p539_p0, %p533_p11 }
  0x20   :  { %543 = shalt.err (!%p540_p1)
}
  0x21   :  { %21 = dma.hbm_to_vmem [thread:$0]  %s774_s0, 128, %s19_s18, [#allocation3]  }
  0x22   :  { %s596_s12 = smov [#allocation7]   ;;  %s544_s16 = scalar_lea.hbm %s776_s2, 128 }
  0x23   :  { %s38_s13 = sshll.u32 %s596_s12, 4  ;;  %p545_p2 = scmp.ne.s32.totalorder %s776_s2, %s544_s16  ;;  %s39_s13 = int_to_ptr.vmem [resolvable:$true] %s38_s13 }
  0x24   :  { %p548_p3 = scmp.lt.u32.totalorder %s544_s16, %s776_s2 }
  0x26   :  { %p550_p4 = pnand %p548_p3, %p545_p2 }
  0x28   :  { %553 = shalt.err (!%p550_p4)
}
  0x29   :  { %s554_s22 = scalar_lea.vmem %s39_s13, 128  ;;  %p559_p6 = scmp.lt.s32.totalorder %s39_s13, %s39_s13 }
  0x2a   :  { %p555_p5 = scmp.ne.s32.totalorder %s39_s13, %s554_s22  ;;  %p560_p7 = scmp.lt.s32.totalorder %s554_s22, %s554_s22 }
  0x2c   :  { %p561_p8 = por %p560_p7, %p559_p6 }
  0x2e   :  { %p562_p9 = pnand %p561_p8, %p555_p5 }
  0x30   :  { %565 = shalt.err (!%p562_p9)
}
  0x31   :  { %41 = dma.hbm_to_vmem [thread:$0]  %s776_s2, 128, %s39_s13, [#allocation6]  }
  0x32   :  { %588 = dma.done.wait [#allocation3], 128  }
  0x33   :  { %589 = vsyncadd [#allocation3], 4294967168 }
  0x34   :  { %590 = dma.done.wait [#allocation6], 256  }
  0x35   :  { %591 = vsyncadd [#allocation6], 4294967040  ;;  %v597_v0 = vmov 2   ;;  %v598_v1 = vmov 0   ;;  %v53_v2 = vld [vmem:[#allocation2] sm:$0xff]  ;;  %v599_v3 = vmov 3   ;;  %v64_v17 = vlaneseq }
  0x36   :  { %466 = vset.pattern.permute.xlu1 %v597_v0  ;;  %464 = vset.pattern.permute.xlu0 %v598_v1  ;;  %v600_v4 = vmov 1   ;;  %v601_v5 = vmov 4   ;;  %v602_v6 = vmov 5   ;;  %v603_v7 = vmov 6   ;;  %v54_v18 = vld [vmem:[#allocation5] sm:$0xff] }
  0x37   :  { %80 = vperm.xlu1 %466, %v53_v2   ;;  %61 = vperm.xlu0 %464, %v53_v2   ;;  %v604_v8 = vmov 8   ;;  %v605_v9 = vmov 7   ;;  %v606_v10 = vmov 11   ;;  %v607_v11 = vmov 9  }
  0x38   :  { %v608_v12 = vmov 14   ;;  %v609_v13 = vmov 10   ;;  %v610_v14 = vmov 12   ;;  %v611_v15 = vmov 13  }
  0x39   :  { %v612_v16 = vmov 15   ;;  %v55_v19 = vunpack.c.0.s8 %v54_v18  ;;  %v65_v20 = vshrl.u32 %v64_v17, 7  ;;  %v56_v48 = vunpack.c.1.s8 %v54_v18 }
  0x3b   :  { %467 = vset.pattern.permute.xlu1 %v599_v3  ;;  %465 = vset.pattern.permute.xlu0 %v600_v4  ;;  %v689_v21 = vsub.s32 0, %v65_v20  ;;  %v57_v22 = vcvt.s32.f32 %v55_v19  ;;  %v691_v23 = vsub.s32 1, %v65_v20  ;;  %v693_v24 = vsub.s32 2, %v65_v20 }
  0x3c   :  { %90 = vperm.xlu1 %467, %v53_v2   ;;  %70 = vperm.xlu0 %465, %v53_v2   ;;  %v696_v28 = vsub.s32 3, %v65_v20  ;;  %v699_v30 = vsub.s32 4, %v65_v20  ;;  %v702_v35 = vsub.s32 5, %v65_v20  ;;  %v707_v42 = vsub.s32 6, %v65_v20 }
  0x3d   :  { %v67_v26 = vrot.slane %v57_v22, %v689_v21  ;;  %v76_v29 = vrot.slane %v57_v22, %v691_v23  ;;  %v86_v31 = vrot.slane %v57_v22, %v693_v24  ;;  %v710_v52 = vsub.s32 7, %v65_v20 }
  0x3e   :  { %v96_v36 = vrot.slane %v57_v22, %v696_v28  ;;  %v106_v38 = vrot.slane %v57_v22, %v699_v30  ;;  %v116_v41 = vrot.slane %v57_v22, %v702_v35  ;;  %v126_v51 = vrot.slane %v57_v22, %v707_v42 }
  0x3f   :  { %v58_v55 = vcvt.s32.f32 %v56_v48  ;;  %v136_v58 = vrot.slane %v57_v22, %v710_v52 }
  0x40   :  { %468 = vset.pattern.permute.xlu1 %v601_v5  ;;  %469 = vset.pattern.permute.xlu0 %v602_v6 }
  0x41   :  { %100 = vperm.xlu1 %468, %v53_v2   ;;  %110 = vperm.xlu0 %469, %v53_v2   ;;  %v146_v59 = vrot.slane %v58_v55, %v689_v21  ;;  %v166_v18 = vrot.slane %v58_v55, %v693_v24  ;;  %v176_v19 = vrot.slane %v58_v55, %v696_v28 }
  0x45   :  { %470 = vset.pattern.permute.xlu1 %v603_v7  ;;  %472 = vset.pattern.permute.xlu0 %v604_v8 }
  0x46   :  { %120 = vperm.xlu1 %470, %v53_v2   ;;  %140 = vperm.xlu0 %472, %v53_v2  }
  0x4a   :  { %471 = vset.pattern.permute.xlu1 %v605_v9  ;;  %475 = vset.pattern.permute.xlu0 %v606_v10 }
  0x4b   :  { %130 = vperm.xlu1 %471, %v53_v2   ;;  %170 = vperm.xlu0 %475, %v53_v2  }
  0x4f   :  { %473 = vset.pattern.permute.xlu1 %v607_v11  ;;  %478 = vset.pattern.permute.xlu0 %v608_v12 }
  0x50   :  { %150 = vperm.xlu1 %473, %v53_v2   ;;  %200 = vperm.xlu0 %478, %v53_v2  }
  0x54   :  { %474 = vset.pattern.permute.xlu1 %v609_v13  ;;  %481 = vset.pattern.permute.xlu0 %v600_v4 }
  0x55   :  { %160 = vperm.xlu1 %474, %v53_v2  }
  0x59   :  { %476 = vset.pattern.permute.xlu1 %v610_v14  ;;  %v156_v14 = vrot.slane %v58_v55, %v691_v23 }
  0x5a   :  { %180 = vperm.xlu1 %476, %v53_v2  }
  0x5e   :  { %477 = vset.pattern.permute.xlu1 %v611_v15 }
  0x5f   :  { %190 = vperm.xlu1 %477, %v53_v2  }
  0x63   :  { %479 = vset.pattern.permute.xlu1 %v612_v16 }
  0x64   :  { %210 = vperm.xlu1 %479, %v53_v2  }
  0x68   :  { %480 = vset.pattern.permute.xlu1 %v598_v1 }
  0xb6   :  { %v81_v25 = vpop.permute.xlu1 %80  ;;  %v62_v27 = vpop.permute.xlu0 %61 }
  0xb7   :  { %v68_v32 = vadd.f32 %v67_v26, %v62_v27  ;;  %v87_v39 = vadd.f32 %v86_v31, %v81_v25  ;;  %v186_v31 = vrot.slane %v58_v55, %v699_v30 }
  0xbb   :  { %v91_v33 = vpop.permute.xlu1 %90  ;;  %v71_v34 = vpop.permute.xlu0 %70 }
  0xbc   :  { %v77_v37 = vadd.f32 %v76_v29, %v71_v34  ;;  %v97_v43 = vadd.f32 %v96_v36, %v91_v33  ;;  %v196_v36 = vrot.slane %v58_v55, %v702_v35 }
  0xbe   :  { %v78_v40 = vmin.f32 %v68_v32, %v77_v37  ;;  %v206_v37 = vrot.slane %v58_v55, %v707_v42 }
  0xc0   :  { %v88_v44 = vmin.f32 %v78_v40, %v87_v39  ;;  %v101_v45 = vpop.permute.xlu1 %100  ;;  %v111_v46 = vpop.permute.xlu0 %110 }
  0xc1   :  { %v107_v47 = vadd.f32 %v106_v38, %v101_v45  ;;  %v117_v50 = vadd.f32 %v116_v41, %v111_v46 }
  0xc2   :  { %v98_v49 = vmin.f32 %v88_v44, %v97_v43  ;;  %v216_v44 = vrot.slane %v58_v55, %v710_v52 }
  0xc4   :  { %v108_v53 = vmin.f32 %v98_v49, %v107_v47 }
  0xc5   :  { %v121_v54 = vpop.permute.xlu1 %120  ;;  %v141_v61 = vpop.permute.xlu0 %140 }
  0xc6   :  { %v118_v56 = vmin.f32 %v108_v53, %v117_v50  ;;  %v127_v57 = vadd.f32 %v126_v51, %v121_v54  ;;  %v147_v12 = vadd.f32 %v146_v59, %v141_v61  ;;  %v219_v50 = vld [vmem:[#allocation7] sm:$0x3] }
  0xc7   :  { %v220_v51 = vunpack.c.0.s8 %v219_v50 }
  0xc8   :  { %v128_v62 = vmin.f32 %v118_v56, %v127_v57 }
  0xc9   :  { %v221_v53 = vcvt.s32.f32 %v220_v51 }
  0xca   :  { %v131_v60 = vpop.permute.xlu1 %130  ;;  %v171_v25 = vpop.permute.xlu0 %170 }
  0xcb   :  { %v137_v63 = vadd.f32 %v136_v58, %v131_v60  ;;  %v177_v29 = vadd.f32 %v176_v19, %v171_v25  ;;  %v239_v55 = vrot.slane %v221_v53, %v691_v23  ;;  %v230_v56 = vrot.slane %v221_v53, %v689_v21 }
  0xcc   :  { %v249_v58 = vrot.slane %v221_v53, %v693_v24 }
  0xcd   :  { %v138_v2 = vmin.f32 %v128_v62, %v137_v63  ;;  %v259_v62 = vrot.slane %v221_v53, %v696_v28 }
  0xcf   :  { %v151_v15 = vpop.permute.xlu1 %150  ;;  %v148_v16 = vmin.f32 %v138_v2, %v147_v12  ;;  %v201_v38 = vpop.permute.xlu0 %200 }
  0xd0   :  { %v157_v17 = vadd.f32 %v156_v14, %v151_v15  ;;  %v207_v43 = vadd.f32 %v206_v37, %v201_v38 }
  0xd2   :  { %v158_v22 = vmin.f32 %v148_v16, %v157_v17  ;;  %v279_v17 = vrot.slane %v221_v53, %v702_v35 }
  0xd4   :  { %v161_v20 = vpop.permute.xlu1 %160 }
  0xd5   :  { %v167_v26 = vadd.f32 %v166_v18, %v161_v20 }
  0xd7   :  { %v168_v27 = vmin.f32 %v158_v22, %v167_v26  ;;  %v289_v22 = vrot.slane %v221_v53, %v707_v42  ;;  %v299_v26 = vrot.slane %v221_v53, %v710_v52 }
  0xd9   :  { %v181_v32 = vpop.permute.xlu1 %180  ;;  %v178_v33 = vmin.f32 %v168_v27, %v177_v29 }
  0xda   :  { %v187_v34 = vadd.f32 %v186_v31, %v181_v32 }
  0xdc   :  { %v188_v40 = vmin.f32 %v178_v33, %v187_v34 }
  0xde   :  { %v191_v39 = vpop.permute.xlu1 %190 }
  0xdf   :  { %v197_v41 = vadd.f32 %v196_v36, %v191_v39 }
  0xe1   :  { %v198_v45 = vmin.f32 %v188_v40, %v197_v41 }
  0xe3   :  { %v208_v46 = vmin.f32 %v198_v45, %v207_v43  ;;  %v211_v47 = vpop.permute.xlu1 %210 }
  0xe4   :  { %v217_v48 = vadd.f32 %v216_v44, %v211_v47 }
  0xe6   :  { %v218_v49 = vmin.f32 %v208_v46, %v217_v48 }
  0xe8   :  { %233 = vperm.xlu0 %481, %v218_v49   ;;  %224 = vperm.xlu1 %480, %v218_v49  }
  0xec   :  { %484 = vset.pattern.permute.xlu0 %v601_v5  ;;  %482 = vset.pattern.permute.xlu1 %v597_v0 }
  0xed   :  { %263 = vperm.xlu0 %484, %v218_v49   ;;  %243 = vperm.xlu1 %482, %v218_v49  }
  0xf1   :  { %487 = vset.pattern.permute.xlu0 %v605_v9  ;;  %483 = vset.pattern.permute.xlu1 %v599_v3 }
  0xf2   :  { %293 = vperm.xlu0 %487, %v218_v49   ;;  %253 = vperm.xlu1 %483, %v218_v49  }
  0xf6   :  { %485 = vset.pattern.permute.xlu1 %v602_v6  ;;  %490 = vset.pattern.permute.xlu0 %v597_v0 }
  0xf7   :  { %273 = vperm.xlu1 %485, %v218_v49  }
  0xfb   :  { %486 = vset.pattern.permute.xlu1 %v603_v7 }
  0xfc   :  { %283 = vperm.xlu1 %486, %v218_v49  }
 0x100   :  { %488 = vset.pattern.permute.xlu1 %v598_v1  ;;  %v269_v1 = vrot.slane %v221_v53, %v699_v30 }
 0x167   :  { %v225_v54 = vpop.permute.xlu1 %224  ;;  %v234_v57 = vpop.permute.xlu0 %233 }
 0x168   :  { %v240_v59 = vadd.f32 %v239_v55, %v234_v57  ;;  %v231_v60 = vadd.f32 %v230_v56, %v225_v54 }
 0x16a   :  { %v241_v63 = vmax.f32 %v231_v60, %v240_v59 }
 0x16c   :  { %v244_v0 = vpop.permute.xlu1 %243  ;;  %v264_v15 = vpop.permute.xlu0 %263 }
 0x16d   :  { %v250_v61 = vadd.f32 %v249_v58, %v244_v0  ;;  %v270_v18 = vadd.f32 %v269_v1, %v264_v15 }
 0x16f   :  { %v251_v12 = vmax.f32 %v241_v63, %v250_v61 }
 0x171   :  { %v254_v2 = vpop.permute.xlu1 %253  ;;  %v294_v27 = vpop.permute.xlu0 %293 }
 0x172   :  { %v260_v14 = vadd.f32 %v259_v62, %v254_v2  ;;  %v300_v33 = vadd.f32 %v299_v26, %v294_v27 }
 0x174   :  { %v261_v16 = vmax.f32 %v251_v12, %v260_v14 }
 0x176   :  { %v274_v19 = vpop.permute.xlu1 %273  ;;  %v271_v20 = vmax.f32 %v261_v16, %v270_v18 }
 0x177   :  { %v280_v25 = vadd.f32 %v279_v17, %v274_v19 }
 0x179   :  { %v281_v31 = vmax.f32 %v271_v20, %v280_v25 }
 0x17b   :  { %v284_v29 = vpop.permute.xlu1 %283 }
 0x17c   :  { %v290_v32 = vadd.f32 %v289_v22, %v284_v29 }
 0x17e   :  { %v291_v34 = vmax.f32 %v281_v31, %v290_v32 }
 0x180   :  { %v301_v36 = vmax.f32 %v291_v34, %v300_v33 }
 0x182   :  { %328 = vperm.xlu0 %490, %v301_v36   ;;  %309 = vperm.xlu1 %488, %v301_v36  }
 0x186   :  { %493 = vset.pattern.permute.xlu0 %v602_v6  ;;  %489 = vset.pattern.permute.xlu1 %v600_v4 }
 0x187   :  { %358 = vperm.xlu0 %493, %v301_v36   ;;  %318 = vperm.xlu1 %489, %v301_v36  }
 0x18b   :  { %496 = vset.pattern.permute.xlu0 %v604_v8  ;;  %491 = vset.pattern.permute.xlu1 %v599_v3  ;;  %v302_v3 = vld [vmem:[%s777_s3] sm:$0xff]  ;;  %s613_s3 = smov [#allocation8]  }
 0x18c   :  { %388 = vperm.xlu0 %496, %v301_v36   ;;  %338 = vperm.xlu1 %491, %v301_v36   ;;  %v303_v4 = vunpack.c.0.s8 %v302_v3  ;;  %v304_v51 = vunpack.c.1.s8 %v302_v3  ;;  %s434_s24 = sshll.u32 %s613_s3, 4  ;;  %s435_s24 = int_to_ptr.vmem [resolvable:$true] %s434_s24 }
 0x18d   :  { %s566_s25 = scalar_lea.vmem %s435_s24, 128  ;;  %p571_p11 = scmp.lt.s32.totalorder %s435_s24, %s435_s24 }
 0x18e   :  { %v306_v57 = vcvt.s32.f32 %v304_v51  ;;  %p567_p10 = scmp.ne.s32.totalorder %s435_s24, %s566_s25  ;;  %p572_p12 = scmp.lt.s32.totalorder %s566_s25, %s566_s25 }
 0x190   :  { %499 = vset.pattern.permute.xlu0 %v606_v10  ;;  %492 = vset.pattern.permute.xlu1 %v601_v5  ;;  %v305_v5 = vcvt.s32.f32 %v303_v4  ;;  %v404_v2 = vrot.slane %v306_v57, %v691_v23  ;;  %v414_v15 = vrot.slane %v306_v57, %v693_v24  ;;  %v424_v16 = vrot.slane %v306_v57, %v696_v28  ;;  %p573_p13 = por %p572_p12, %p571_p11 }
 0x191   :  { %418 = vperm.xlu0 %499, %v301_v36   ;;  %348 = vperm.xlu1 %492, %v301_v36  }
 0x192   :  { %v315_v8 = vrot.slane %v305_v5, %v689_v21  ;;  %v354_v45 = vrot.slane %v305_v5, %v699_v30  ;;  %v364_v47 = vrot.slane %v305_v5, %v702_v35  ;;  %v374_v54 = vrot.slane %v305_v5, %v707_v42  ;;  %p574_p0 = pnand %p573_p13, %p567_p10 }
 0x193   :  { %v384_v60 = vrot.slane %v305_v5, %v710_v52  ;;  %v394_v30 = vrot.slane %v306_v57, %v689_v21 }
 0x195   :  { %494 = vset.pattern.permute.xlu1 %v603_v7  ;;  %v324_v7 = vrot.slane %v305_v5, %v691_v23 }
 0x196   :  { %368 = vperm.xlu1 %494, %v301_v36  }
 0x19a   :  { %495 = vset.pattern.permute.xlu1 %v605_v9  ;;  %v334_v9 = vrot.slane %v305_v5, %v693_v24 }
 0x19b   :  { %378 = vperm.xlu1 %495, %v301_v36  }
 0x19f   :  { %497 = vset.pattern.permute.xlu1 %v607_v11 }
 0x1a0   :  { %398 = vperm.xlu1 %497, %v301_v36  }
 0x1a4   :  { %498 = vset.pattern.permute.xlu1 %v609_v13  ;;  %v344_v13 = vrot.slane %v305_v5, %v696_v28 }
 0x1a5   :  { %408 = vperm.xlu1 %498, %v301_v36  }
 0x201   :  { %v310_v6 = vpop.permute.xlu1 %309  ;;  %v329_v38 = vpop.permute.xlu0 %328 }
 0x202   :  { %v316_v37 = vadd.f32 %v315_v8, %v310_v6  ;;  %v335_v40 = vadd.f32 %v334_v9, %v329_v38 }
 0x206   :  { %v319_v10 = vpop.permute.xlu1 %318  ;;  %v359_v50 = vpop.permute.xlu0 %358 }
 0x207   :  { %v325_v11 = vadd.f32 %v324_v7, %v319_v10  ;;  %v365_v55 = vadd.f32 %v364_v47, %v359_v50 }
 0x209   :  { %v326_v39 = vmin.f32 %v316_v37, %v325_v11 }
 0x20b   :  { %v339_v41 = vpop.permute.xlu1 %338  ;;  %v336_v43 = vmin.f32 %v326_v39, %v335_v40  ;;  %v389_v35 = vpop.permute.xlu0 %388 }
 0x20c   :  { %v345_v44 = vadd.f32 %v344_v13, %v339_v41  ;;  %v395_v1 = vadd.f32 %v394_v30, %v389_v35 }
 0x20e   :  { %v346_v48 = vmin.f32 %v336_v43, %v345_v44 }
 0x210   :  { %v349_v46 = vpop.permute.xlu1 %348  ;;  %v419_v17 = vpop.permute.xlu0 %418 }
 0x211   :  { %v355_v49 = vadd.f32 %v354_v45, %v349_v46  ;;  %v425_v21 = vadd.f32 %v424_v16, %v419_v17 }
 0x213   :  { %v356_v53 = vmin.f32 %v346_v48, %v355_v49 }
 0x215   :  { %v369_v56 = vpop.permute.xlu1 %368  ;;  %v366_v58 = vmin.f32 %v356_v53, %v365_v55 }
 0x216   :  { %v375_v59 = vadd.f32 %v374_v54, %v369_v56 }
 0x218   :  { %v376_v61 = vmin.f32 %v366_v58, %v375_v59 }
 0x21a   :  { %v379_v0 = vpop.permute.xlu1 %378 }
 0x21b   :  { %v385_v62 = vadd.f32 %v384_v60, %v379_v0 }
 0x21d   :  { %v386_v63 = vmin.f32 %v376_v61, %v385_v62 }
 0x21f   :  { %v399_v12 = vpop.permute.xlu1 %398  ;;  %v396_v14 = vmin.f32 %v386_v63, %v395_v1 }
 0x220   :  { %v405_v42 = vadd.f32 %v404_v2, %v399_v12 }
 0x222   :  { %v406_v52 = vmin.f32 %v396_v14, %v405_v42 }
 0x224   :  { %v409_v18 = vpop.permute.xlu1 %408 }
 0x225   :  { %v415_v19 = vadd.f32 %v414_v15, %v409_v18 }
 0x227   :  { %v416_v20 = vmin.f32 %v406_v52, %v415_v19 }
 0x229   :  { %v426_v25 = vmin.f32 %v416_v20, %v425_v21 }
 0x22b   :  { %427 = vst [vmem:[#allocation8] sm:$0xff] %v426_v25 }
 0x22c   :  { %577 = shalt.err (!%p574_p0)
}
 0x22d   :  { %s578_s28 = scalar_lea.hbm %s778_s4, 128 }
 0x22e   :  { %p579_p1 = scmp.ne.s32.totalorder %s778_s4, %s578_s28  ;;  %p582_p2 = scmp.lt.u32.totalorder %s578_s28, %s778_s4 }
 0x230   :  { %p584_p3 = pnand %p582_p2, %p579_p1 }
 0x232   :  { %587 = shalt.err (!%p584_p3)
}
 0x233   :  { %437 = dma.vmem_to_hbm [thread:$0]  %s435_s24, 128, %s778_s4, [#allocation4]  }
 0x234   :  { %592 = dma.done.wait [#allocation4], 128  }
 0x235   :  { %593 = vsyncadd [#allocation4], 4294967168 }
 0x236   :  { %441 = vsyncpa [#allocation3], 1 }
 0x237   :  { %442 = vsyncpa [#allocation6], 1 }
 0x238   :  { %443 = vsyncpa [#allocation4], 1 }

</bundles_post_ra>
